<compile_context>
chip_gen: v7x
topology: tpu7x:2x2x1
jax: 0.10.0
libtpu: 0.0.40
codegen_flags: <defaults>
</compile_context>

<pallas_src>
import functools

import jax
import jax.numpy as jnp
from jax.experimental import pallas as pl
from jax.experimental.pallas import tpu as pltpu

_LANE = 128
_SUBLANE = 8


def _round_up(n: int, m: int) -> int:
    return (n + m - 1) // m * m


def _cdiv(a: int, b: int) -> int:
    return -(-a // b)


def _dqn_kernel(x_ref, w1_ref, b1_ref, w2_ref, b2_ref, w3_ref, b3_ref, out_ref):
    # One batch tile per grid step; weights/biases are resident (block (0,0)).
    # Dots accumulate in f32 (preferred_element_type); weights may be bf16 and
    # the activation cast happens here (not as a separate XLA pass outside).
    x = x_ref[...].astype(w1_ref.dtype)
    h1 = jnp.maximum(
        jnp.dot(x, w1_ref[...], preferred_element_type=jnp.float32) + b1_ref[...],
        0.0)
    h2 = jnp.maximum(
        jnp.dot(h1.astype(w2_ref.dtype), w2_ref[...],
                preferred_element_type=jnp.float32) + b2_ref[...],
        0.0)
    y = jnp.dot(h2.astype(w3_ref.dtype), w3_ref[...],
                preferred_element_type=jnp.float32) + b3_ref[...]
    out_ref[...] = y.astype(out_ref.dtype)


def prepare_params(params, compute_dtype=jnp.bfloat16):
    """One-time pad + cast of the DQN weights (hoisted out of the forward).

    Weights are stored [in, out]. Only the hidden dim is zero-padded (to a lane
    multiple) — exact: padded weight columns and bias lanes are 0, ReLU(0)=0,
    and the padded rows of the next weight are 0. obs and out_dim stay unpadded
    (full-dim blocks). Biases stay f32; weights are cast to `compute_dtype`
    (bf16 default for the bf16-native MXUs on v6e/v7x; f32 accumulation is
    preserved in the kernel).
    """
    w1, b1, w2, b2, w3, b3 = params
    obs, hidden = w1.shape
    out_dim = w3.shape[1]
    hid_p = _round_up(hidden, _LANE)

    def pad2(a, rows, cols):
        return jnp.pad(a, ((0, rows - a.shape[0]), (0, cols - a.shape[1])))

    return (
        pad2(w1, obs, hid_p).astype(compute_dtype),
        pad2(b1, 1, hid_p).astype(jnp.float32),
        pad2(w2, hid_p, hid_p).astype(compute_dtype),
        pad2(b2, 1, hid_p).astype(jnp.float32),
        pad2(w3, hid_p, out_dim).astype(compute_dtype),
        pad2(b3, 1, out_dim).astype(jnp.float32),
    )


def dqn_forward(x, prepared, num_hours, num_actions, *, block_batch=512):
    """x: [batch, obs] f32; prepared: output of prepare_params().
    Returns [batch, num_hours, num_actions] f32."""
    w1p, b1p, w2p, b2p, w3p, b3p = prepared
    batch, obs = x.shape
    hid_p = w1p.shape[1]
    out_dim = w3p.shape[1]
    assert out_dim == num_hours * num_actions

    # Balanced batch tiles: minimal padding and >= 2 tiles when batch is big
    # enough, so v7x can shard the batch across both TensorCores.
    n_tiles = _cdiv(batch, block_batch)
    if batch > 16 and n_tiles < 2:
        n_tiles = 2
    tb = _round_up(_cdiv(batch, n_tiles), _SUBLANE)
    batch_p = n_tiles * tb

    xp = x if batch_p == batch else jnp.pad(x, ((0, batch_p - batch), (0, 0)))

    # Scoped-VMEM budget from the actual footprint, clamped generation-aware.
    w_itm = jnp.dtype(w1p.dtype).itemsize
    w_bytes = (obs * hid_p + hid_p * hid_p + hid_p * out_dim) * w_itm \
        + (2 * hid_p + out_dim) * 4
    io_bytes = 2 * tb * obs * 4 + 2 * tb * out_dim * 4        # double-buffered x/out
    inter_bytes = 3 * tb * hid_p * 4                          # live h1/h2 + slack
    try:
        vmem_cap = int(pltpu.get_tpu_info().vmem_capacity_bytes) * 3 // 4
    except Exception:  # best-effort hardware query; 48 MiB is safe on v7x (64 MiB)
        vmem_cap = 48 << 20
    vmem_bytes = min(max(2 * (2 * w_bytes + io_bytes + inter_bytes), 4 << 20),
                     vmem_cap)

    out2d = pl.pallas_call(
        _dqn_kernel,
        out_shape=jax.ShapeDtypeStruct((batch_p, out_dim), jnp.float32),
        grid=(n_tiles,),
        in_specs=[
            pl.BlockSpec((tb, obs), lambda i: (i, 0)),          # x tile (pipelined)
            pl.BlockSpec((obs, hid_p), lambda i: (0, 0)),       # w1 (resident)
            pl.BlockSpec((1, hid_p), lambda i: (0, 0)),         # b1
            pl.BlockSpec((hid_p, hid_p), lambda i: (0, 0)),     # w2
            pl.BlockSpec((1, hid_p), lambda i: (0, 0)),         # b2
            pl.BlockSpec((hid_p, out_dim), lambda i: (0, 0)),   # w3
            pl.BlockSpec((1, out_dim), lambda i: (0, 0)),       # b3
        ],
        out_specs=pl.BlockSpec((tb, out_dim), lambda i: (i, 0)),
        compiler_params=pltpu.CompilerParams(
            dimension_semantics=("parallel",),   # shard batch tiles across TCs
            vmem_limit_bytes=int(vmem_bytes),
        ),
    )(xp, w1p, b1p, w2p, b2p, w3p, b3p)

    if batch_p != batch:
        out2d = out2d[:batch]
    return out2d.reshape(batch, num_hours, num_actions)


def init_dqn_params(key, obs_size, hidden_size, num_hours, num_actions):
    """Deterministic synthetic init (uniform, PyTorch-Linear-style bounds).
    Weights are stored as [in, out] (i.e. already transposed vs torch)."""
    out_dim = num_hours * num_actions
    ks = jax.random.split(key, 6)

    def lin(kw, kb, fan_in, fan_out):
        bound = 1.0 / jnp.sqrt(jnp.float32(fan_in))
        w = jax.random.uniform(kw, (fan_in, fan_out), jnp.float32, -bound, bound)
        b = jax.random.uniform(kb, (1, fan_out), jnp.float32, -bound, bound)
        return w, b

    w1, b1 = lin(ks[0], ks[1], obs_size, hidden_size)
    w2, b2 = lin(ks[2], ks[3], hidden_size, hidden_size)
    w3, b3 = lin(ks[4], ks[5], hidden_size, out_dim)
    return (w1, b1, w2, b2, w3, b3)


def _reference(x, params):
    w1, b1, w2, b2, w3, b3 = params
    h1 = jnp.maximum(x @ w1 + b1, 0.0)
    h2 = jnp.maximum(h1 @ w2 + b2, 0.0)
    return h2 @ w3 + b3


if __name__ == "__main__":
    obs_size, hidden_size, num_hours, num_actions = 24, 32, 8, 4

    key = jax.random.PRNGKey(0)
    k_x, k_p, k_x2 = jax.random.split(key, 3)
    params = init_dqn_params(k_p, obs_size, hidden_size, num_hours, num_actions)

    # One-time padded/cast parameter sets (hoisted out of the forward).
    params_f32 = prepare_params(params, compute_dtype=jnp.float32)
    params_bf16 = prepare_params(params)  # bf16 default = v6e/v7x perf path

    fwd = jax.jit(functools.partial(dqn_forward, num_hours=num_hours,
                                    num_actions=num_actions))

    # Tolerances: MXU f32 matmuls on TPU use bf16-based passes (as does the XLA
    # reference at default precision), so the f32-path check uses a modest 1e-2
    # tolerance on these O(1)-magnitude outputs; the bf16 path is looser.

    # 1) Small-batch check (f32 weights): grid=(1,), tb=8.
    batch = 2
    x = jax.random.normal(k_x, (batch, obs_size), jnp.float32)
    out = jax.block_until_ready(fwd(x, params_f32))
    assert out.shape == (batch, num_hours, num_actions), out.shape
    ref = _reference(x, params).reshape(batch, num_hours, num_actions)
    assert jnp.allclose(out, ref, atol=1e-2, rtol=1e-2), "f32 mismatch vs reference"

    # 2) Ragged batch -> balanced tiles: grid=(2,), tb=152, only 4 padded rows.
    batch2 = 300
    x2 = jax.random.normal(k_x2, (batch2, obs_size), jnp.float32)
    out2 = jax.block_until_ready(fwd(x2, params_f32))
    ref2 = _reference(x2, params).reshape(batch2, num_hours, num_actions)
    assert jnp.allclose(out2, ref2, atol=1e-2, rtol=1e-2), "grid mismatch vs reference"

    # 3) bf16 weight path (f32 accumulation) — loose tolerance sanity check.
    #    Note: activations are cast to bf16 inside the kernel.
    out_bf16 = jax.block_until_ready(fwd(x2, params_bf16))
    assert jnp.allclose(out_bf16, ref2, atol=0.3, rtol=0.05), "bf16 path mismatch"

    print("KERNEL_OK")
</pallas_src>

<mosaic_0001>
module attributes {stable_mosaic.version = 11 : i64} {
  func.func @_dqn_kernel(%arg0: i32, %arg1: memref<8x24xf32, #tpu.memory_space<vmem>>, %arg2: memref<24x128xf32, #tpu.memory_space<vmem>>, %arg3: memref<1x128xf32, #tpu.memory_space<vmem>>, %arg4: memref<128x128xf32, #tpu.memory_space<vmem>>, %arg5: memref<1x128xf32, #tpu.memory_space<vmem>>, %arg6: memref<128x32xf32, #tpu.memory_space<vmem>>, %arg7: memref<1x32xf32, #tpu.memory_space<vmem>>, %arg8: memref<8x32xf32, #tpu.memory_space<vmem>>) attributes {dimension_semantics = [#tpu.dimension_semantics<parallel>], iteration_bounds = array<i64: 1>, scalar_prefetch = 0 : i64, scratch_operands = 0 : i64, tpu.core_type = #tpu.core_type<tc>, window_params = [{transform_indices = @transform_0, window_bounds = array<i64: 8, 24>}, {pipeline_mode = #tpu.pipeline_mode<synchronous>, transform_indices = @transform_1, window_bounds = array<i64: 24, 128>}, {pipeline_mode = #tpu.pipeline_mode<synchronous>, transform_indices = @transform_2, window_bounds = array<i64: 1, 128>}, {pipeline_mode = #tpu.pipeline_mode<synchronous>, transform_indices = @transform_3, window_bounds = array<i64: 128, 128>}, {pipeline_mode = #tpu.pipeline_mode<synchronous>, transform_indices = @transform_4, window_bounds = array<i64: 1, 128>}, {pipeline_mode = #tpu.pipeline_mode<synchronous>, transform_indices = @transform_5, window_bounds = array<i64: 128, 32>}, {pipeline_mode = #tpu.pipeline_mode<synchronous>, transform_indices = @transform_6, window_bounds = array<i64: 1, 32>}, {transform_indices = @transform_7, window_bounds = array<i64: 8, 32>}]} {
    %c0 = arith.constant 0 : index
    %c0_0 = arith.constant 0 : index
    %0 = vector.load %arg1[%c0, %c0_0] : memref<8x24xf32, #tpu.memory_space<vmem>>, vector<8x24xf32>
    %c0_1 = arith.constant 0 : index
    %c0_2 = arith.constant 0 : index
    %1 = vector.load %arg2[%c0_1, %c0_2] : memref<24x128xf32, #tpu.memory_space<vmem>>, vector<24x128xf32>
    %cst = arith.constant dense<0.000000e+00> : vector<8x128xf32>
    %2 = tpu.matmul %0, %1, %cst {dimension_numbers = #tpu.dot_dimension_numbers<[1], [0], [0], [1], [0, 0, 1, 1], [], []>} : vector<8x24xf32>, vector<24x128xf32>, vector<8x128xf32> -> vector<8x128xf32>
    %c0_3 = arith.constant 0 : index
    %c0_4 = arith.constant 0 : index
    %3 = vector.load %arg3[%c0_3, %c0_4] : memref<1x128xf32, #tpu.memory_space<vmem>>, vector<1x128xf32>
    %4 = vector.broadcast %3 : vector<1x128xf32> to vector<8x128xf32>
    %5 = arith.addf %2, %4 : vector<8x128xf32>
    %cst_5 = arith.constant 0.000000e+00 : f32
    %6 = vector.broadcast %cst_5 : f32 to vector<8x128xf32>
    %7 = arith.maximumf %5, %6 : vector<8x128xf32>
    %c0_6 = arith.constant 0 : index
    %c0_7 = arith.constant 0 : index
    %8 = vector.load %arg4[%c0_6, %c0_7] : memref<128x128xf32, #tpu.memory_space<vmem>>, vector<128x128xf32>
    %cst_8 = arith.constant dense<0.000000e+00> : vector<8x128xf32>
    %9 = tpu.matmul %7, %8, %cst_8 {dimension_numbers = #tpu.dot_dimension_numbers<[1], [0], [0], [1], [0, 0, 1, 1], [], []>} : vector<8x128xf32>, vector<128x128xf32>, vector<8x128xf32> -> vector<8x128xf32>
    %c0_9 = arith.constant 0 : index
    %c0_10 = arith.constant 0 : index
    %10 = vector.load %arg5[%c0_9, %c0_10] : memref<1x128xf32, #tpu.memory_space<vmem>>, vector<1x128xf32>
    %11 = vector.broadcast %10 : vector<1x128xf32> to vector<8x128xf32>
    %12 = arith.addf %9, %11 : vector<8x128xf32>
    %cst_11 = arith.constant 0.000000e+00 : f32
    %13 = vector.broadcast %cst_11 : f32 to vector<8x128xf32>
    %14 = arith.maximumf %12, %13 : vector<8x128xf32>
    %c0_12 = arith.constant 0 : index
    %c0_13 = arith.constant 0 : index
    %15 = vector.load %arg6[%c0_12, %c0_13] : memref<128x32xf32, #tpu.memory_space<vmem>>, vector<128x32xf32>
    %cst_14 = arith.constant dense<0.000000e+00> : vector<8x32xf32>
    %16 = tpu.matmul %14, %15, %cst_14 {dimension_numbers = #tpu.dot_dimension_numbers<[1], [0], [0], [1], [0, 0, 1, 1], [], []>} : vector<8x128xf32>, vector<128x32xf32>, vector<8x32xf32> -> vector<8x32xf32>
    %c0_15 = arith.constant 0 : index
    %c0_16 = arith.constant 0 : index
    %17 = vector.load %arg7[%c0_15, %c0_16] : memref<1x32xf32, #tpu.memory_space<vmem>>, vector<1x32xf32>
    %18 = vector.broadcast %17 : vector<1x32xf32> to vector<8x32xf32>
    %19 = arith.addf %16, %18 : vector<8x32xf32>
    %c0_17 = arith.constant 0 : index
    %c0_18 = arith.constant 0 : index
    %20 = vector.load %arg8[%c0_17, %c0_18] : memref<8x32xf32, #tpu.memory_space<vmem>>, vector<8x32xf32>
    tpu.vector_store %arg8[%c0_17, %c0_18], %19 {strides = array<i32>} : memref<8x32xf32, #tpu.memory_space<vmem>>, vector<8x32xf32>,
    return
  }
  func.func @transform_0(%arg0: i32) -> (i32, i32) {
    %c0_i32 = arith.constant 0 : i32
    %c0_i32_0 = arith.constant 0 : i32
    return %arg0, %c0_i32 : i32, i32
  }
  func.func @transform_1(%arg0: i32) -> (i32, i32) {
    %c0_i32 = arith.constant 0 : i32
    %c0_i32_0 = arith.constant 0 : i32
    %c0_i32_1 = arith.constant 0 : i32
    return %c0_i32, %c0_i32_0 : i32, i32
  }
  func.func @transform_2(%arg0: i32) -> (i32, i32) {
    %c0_i32 = arith.constant 0 : i32
    %c0_i32_0 = arith.constant 0 : i32
    %c0_i32_1 = arith.constant 0 : i32
    return %c0_i32, %c0_i32_0 : i32, i32
  }
  func.func @transform_3(%arg0: i32) -> (i32, i32) {
    %c0_i32 = arith.constant 0 : i32
    %c0_i32_0 = arith.constant 0 : i32
    %c0_i32_1 = arith.constant 0 : i32
    return %c0_i32, %c0_i32_0 : i32, i32
  }
  func.func @transform_4(%arg0: i32) -> (i32, i32) {
    %c0_i32 = arith.constant 0 : i32
    %c0_i32_0 = arith.constant 0 : i32
    %c0_i32_1 = arith.constant 0 : i32
    return %c0_i32, %c0_i32_0 : i32, i32
  }
  func.func @transform_5(%arg0: i32) -> (i32, i32) {
    %c0_i32 = arith.constant 0 : i32
    %c0_i32_0 = arith.constant 0 : i32
    %c0_i32_1 = arith.constant 0 : i32
    return %c0_i32, %c0_i32_0 : i32, i32
  }
  func.func @transform_6(%arg0: i32) -> (i32, i32) {
    %c0_i32 = arith.constant 0 : i32
    %c0_i32_0 = arith.constant 0 : i32
    %c0_i32_1 = arith.constant 0 : i32
    return %c0_i32, %c0_i32_0 : i32, i32
  }
  func.func @transform_7(%arg0: i32) -> (i32, i32) {
    %c0_i32 = arith.constant 0 : i32
    %c0_i32_0 = arith.constant 0 : i32
    return %arg0, %c0_i32 : i32, i32
  }
}

</mosaic_0001>

<bundles_post_ra>
// kernel: dqn_forward.1
= control target key start
LH: loop header
LB: loop body
LE: loop exit
PB: predicated region body
PF: predicated region fallthrough
CT: control target
= control target key end

     0   :  { %v480_v0 = vmov 0.0|0.0   ;;  %vm481_vm0 = vmmov 0   ;;  %v482_v3 = vmov 0.0   ;;  %vm37_vm1 = vcmask 195584   ;;  %s663_s1 = inlined_call_operand.vmem [shape: f32[24,128], index: 1, kind: input, shape index: {}]   ;;  %s664_s3 = inlined_call_operand.vmem [shape: f32[128,128], index: 3, kind: input, shape index: {}]   ;;  %s665_s0 = inlined_call_operand.vmem [shape: f32[8,24], index: 0, kind: input, shape index: {}]   ;;  %s666_s5 = inlined_call_operand.vmem [shape: f32[128,32], index: 5, kind: input, shape index: {}]   ;;  %s667_s2 = inlined_call_operand.vmem [shape: f32[1,128], index: 2, kind: input, shape index: {}]   ;;  %s668_s4 = inlined_call_operand.vmem [shape: f32[1,128], index: 4, kind: input, shape index: {}]   ;;  %s669_s6 = inlined_call_operand.vmem [shape: f32[1,32], index: 6, kind: input, shape index: {}]   ;;  %s670_s7 = inlined_call_operand.vmem [shape: f32[8,32], index: 7, kind: output, shape index: {}]  }
   0x1   :  { %426 = vmatprep.subr.bf16.mxu0 %v480_v0  ;;  %v27_v1 = vld [vmem:[%s663_s1] sm:$0xff]  ;;  %v28_v2 = vld [vmem:[%s663_s1 + $0x8] sm:$0xff]  ;;  %353 = vmatprep.mubr.msk.f32.mxu0 %vm481_vm0, %v482_v3  ;;  %v114_v8 = vld [vmem:[%s664_s3 + $0x10] sm:$0xff]  ;;  %vm299_vm2 = vcmask 261120  }
   0x2   :  { %v427_v4 = vpack.c.bf16 %v28_v2, %v27_v1  ;;  %429 = vmatprep.subr.bf16.mxu1 %v480_v0  ;;  %v112_v5 = vld [vmem:[%s664_s3] sm:$0xff]  ;;  %v113_v6 = vld [vmem:[%s664_s3 + $0x8] sm:$0xff]  ;;  %388 = vmatprep.mubr.msk.f32.mxu1 %vm481_vm0, %v482_v3  ;;  %v115_v9 = vld [vmem:[%s664_s3 + $0x18] sm:$0xff] }
   0x3   :  { %v430_v7 = vpack.c.bf16 %v113_v6, %v112_v5  ;;  %v29_v10 = vld [vmem:[%s663_s1 + $0x10] sm:$0xff]  ;;  %v433_v11 = vpack.c.bf16 %v115_v9, %v114_v8  ;;  %v26_v12 = vld [vmem:[%s665_s0] sm:$0xff]  ;;  %v117_v14 = vld [vmem:[%s664_s3 + $0x28] sm:$0xff] }
   0x4   :  { %428 = vmatpush3.bf16.msra.mxu0 %v427_v4  ;;  %v116_v13 = vld [vmem:[%s664_s3 + $0x20] sm:$0xff]  ;;  %v118_v16 = vld [vmem:[%s664_s3 + $0x30] sm:$0xff]  ;;  %v119_v17 = vld [vmem:[%s664_s3 + $0x38] sm:$0xff] }
   0x5   :  { %351 = vmatprep.subr.mxu0 %v482_v3  ;;  %431 = vmatpush3.bf16.msra.mxu1 %v430_v7  ;;  %v436_v15 = vpack.c.bf16 %v117_v14, %v116_v13  ;;  %v439_v18 = vpack.c.bf16 %v119_v17, %v118_v16  ;;  %v120_v19 = vld [vmem:[%s664_s3 + $0x40] sm:$0xff]  ;;  %v121_v20 = vld [vmem:[%s664_s3 + $0x48] sm:$0xff]  ;;  %v122_v22 = vld [vmem:[%s664_s3 + $0x50] sm:$0xff] }
   0x6   :  { %432 = vmatprep.subr.bf16.mxu1 %v480_v0  ;;  %v442_v21 = vpack.c.bf16 %v121_v20, %v120_v19  ;;  %v123_v23 = vld [vmem:[%s664_s3 + $0x58] sm:$0xff]  ;;  %v124_v25 = vld [vmem:[%s664_s3 + $0x60] sm:$0xff]  ;;  %v125_v26 = vld [vmem:[%s664_s3 + $0x68] sm:$0xff] }
   0x7   :  { %v445_v24 = vpack.c.bf16 %v123_v23, %v122_v22  ;;  %v448_v27 = vpack.c.bf16 %v125_v26, %v124_v25  ;;  %v126_v28 = vld [vmem:[%s664_s3 + $0x70] sm:$0xff]  ;;  %v127_v29 = vld [vmem:[%s664_s3 + $0x78] sm:$0xff]  ;;  %v206_v31 = vld [vmem:[%s666_s5] sm:$0xff] }
   0x8   :  { %352 = vmatpush3.msra.mxu0 %v29_v10  ;;  %v451_v30 = vpack.c.bf16 %v127_v29, %v126_v28  ;;  %v207_v32 = vld [vmem:[%s666_s5 + $0x8] sm:$0xff]  ;;  %v208_v33 = vld [vmem:[%s666_s5 + $0x10] sm:$0xff]  ;;  %v209_v35 = vld [vmem:[%s666_s5 + $0x18] sm:$0xff] }
   0x9   :  { %354 = vmatmul.mubr.msk.f32.vlgmr.msra.gmra.mrb[0].mxu0 %vm37_vm1, %v26_v12  ;;  %434 = vmatpush3.bf16.msra.mxu1 %v433_v11  ;;  %v454_v34 = vpack.c.bf16 %v207_v32, %v206_v31  ;;  %v457_v36 = vpack.c.bf16 %v209_v35, %v208_v33  ;;  %v210_v37 = vld [vmem:[%s666_s5 + $0x20] sm:$0xff]  ;;  %v211_v38 = vld [vmem:[%s666_s5 + $0x28] sm:$0xff]  ;;  %v212_v40 = vld [vmem:[%s666_s5 + $0x30] sm:$0xff] }
   0xa   :  { %435 = vmatprep.subr.bf16.mxu1 %v480_v0  ;;  %453 = vmatprep.subr.bf16.mxu0 %v480_v0  ;;  %v460_v39 = vpack.c.bf16 %v211_v38, %v210_v37  ;;  %v213_v41 = vld [vmem:[%s666_s5 + $0x38] sm:$0xff]  ;;  %v214_v43 = vld [vmem:[%s666_s5 + $0x40] sm:$0xff]  ;;  %v215_v44 = vld [vmem:[%s666_s5 + $0x48] sm:$0xff] }
   0xb   :  { %423 = vmatprep.mubr.msk.f32.mxu0 %vm481_vm0, %v482_v3  ;;  %455 = vmatpush3.bf16.msra.mxu0 %v454_v34  ;;  %v463_v42 = vpack.c.bf16 %v213_v41, %v212_v40  ;;  %v466_v45 = vpack.c.bf16 %v215_v44, %v214_v43  ;;  %v216_v46 = vld [vmem:[%s666_s5 + $0x50] sm:$0xff]  ;;  %v217_v47 = vld [vmem:[%s666_s5 + $0x58] sm:$0xff]  ;;  %v218_v49 = vld [vmem:[%s666_s5 + $0x60] sm:$0xff] }
   0xc   :  { %456 = vmatprep.subr.bf16.mxu0 %v480_v0  ;;  %v469_v48 = vpack.c.bf16 %v217_v47, %v216_v46  ;;  %v219_v50 = vld [vmem:[%s666_s5 + $0x68] sm:$0xff]  ;;  %v305_v52 = vld [vmem:[%s667_s2] ss:$0 sm:$0xff]  ;;  %v220_v57 = vld [vmem:[%s666_s5 + $0x70] sm:$0xff] }
   0xd   :  { %437 = vmatpush3.bf16.msra.mxu1 %v436_v15  ;;  %v472_v51 = vpack.c.bf16 %v219_v50, %v218_v49  ;;  %v221_v58 = vld [vmem:[%s666_s5 + $0x78] sm:$0xff]  ;;  %v307_v60 = vld [vmem:[%s668_s4] ss:$0 sm:$0xff] }
   0xe   :  { %438 = vmatprep.subr.bf16.mxu1 %v480_v0  ;;  %v475_v59 = vpack.c.bf16 %v221_v58, %v220_v57  ;;  %v308_v1 = vld [vmem:[%s669_s6] ss:$0 sm:$0xff] }
   0xf   :  { %458 = vmatpush3.bf16.msra.mxu0 %v457_v36 }
  0x10   :  { %459 = vmatprep.subr.bf16.mxu0 %v480_v0 }
  0x11   :  { %440 = vmatpush3.bf16.msra.mxu1 %v439_v18 }
  0x12   :  { %441 = vmatprep.subr.bf16.mxu1 %v480_v0 }
  0x13   :  { %461 = vmatpush3.bf16.msra.mxu0 %v460_v39 }
  0x14   :  { %462 = vmatprep.subr.bf16.mxu0 %v480_v0 }
  0x15   :  { %443 = vmatpush3.bf16.msra.mxu1 %v442_v21 }
  0x16   :  { %444 = vmatprep.subr.bf16.mxu1 %v480_v0 }
  0x17   :  { %464 = vmatpush3.bf16.msra.mxu0 %v463_v42 }
  0x18   :  { %465 = vmatprep.subr.bf16.mxu0 %v480_v0 }
  0x19   :  { %446 = vmatpush3.bf16.msra.mxu1 %v445_v24 }
  0x1a   :  { %447 = vmatprep.subr.bf16.mxu1 %v480_v0 }
  0x1b   :  { %467 = vmatpush3.bf16.msra.mxu0 %v466_v45 }
  0x1c   :  { %468 = vmatprep.subr.bf16.mxu0 %v480_v0 }
  0x1d   :  { %449 = vmatpush3.bf16.msra.mxu1 %v448_v27 }
  0x1e   :  { %450 = vmatprep.subr.bf16.mxu1 %v480_v0 }
  0x1f   :  { %470 = vmatpush3.bf16.msra.mxu0 %v469_v48 }
  0x20   :  { %471 = vmatprep.subr.bf16.mxu0 %v480_v0 }
  0x21   :  { %452 = vmatpush3.bf16.msra.mxu1 %v451_v30 }
  0x23   :  { %473 = vmatpush3.bf16.msra.mxu0 %v472_v51 }
  0x24   :  { %474 = vmatprep.subr.bf16.mxu0 %v480_v0 }
  0x27   :  { %476 = vmatpush3.bf16.msra.mxu0 %v475_v59 }
  0xdc   :  { %v107_v53 = vpop.f32.mrb[0].mxu0 }
  0xdd   :  { %v108_v54 = vadd.f32 %v305_v52, %v107_v53  ;;  %v355_v55 = vpop.f32.mrb[1].mxu0 }
  0xdf   :  { %v111_v56 = vmax.f32 %v108_v54, 0.0 }
  0xe1   :  { %389 = vmatmul.mubr.f32.vlgmr.msra.gmra.mrb[0].mxu1 %v111_v56 }
 0x1b4   :  { %v201_v61 = vpop.f32.mrb[0].mxu1 }
 0x1b5   :  { %v202_v62 = vadd.f32 %v307_v60, %v201_v61  ;;  %v390_v63 = vpop.f32.mrb[1].mxu1 }
 0x1b7   :  { %v205_v0 = vmax.f32 %v202_v62, 0.0 }
 0x1b9   :  { %424 = vmatmul.mubr.f32.vlgmr.msra.gmra.mrb[2].mxu0 %v205_v0 }
 0x28c   :  { %v295_v2 = vpop.f32.mrb[2].mxu0 }
 0x28d   :  { %v296_v3 = vadd.f32 %v308_v1, %v295_v2  ;;  %v425_v4 = vpop.f32.mrb[3].mxu0 }
 0x28f   :  { %300 = vst.msk [vmem:[%s670_s7] sm:$0xff] %vm299_vm2, %v296_v3 }

</bundles_post_ra>
